<compile_context>
chip_gen: v6e
topology: v6e:2x2x1
jax: 0.10.0
libtpu: 0.0.40
codegen_flags: <defaults>
</compile_context>

<pallas_src>
import functools

import jax
import jax.numpy as jnp
from jax.experimental import pallas as pl
from jax.experimental.pallas import tpu as pltpu


# ----------------------------------------------------------------------------
# Kernel: y_tile += x_tile @ P_tile on the MXU, f32 accumulator over the k axis
# ----------------------------------------------------------------------------
def _permutation_kernel(p_ref, x_ref, y_ref, acc_ref):
    k = pl.program_id(2)

    @pl.when(k == 0)
    def _():
        acc_ref[...] = jnp.zeros_like(acc_ref)

    # Operands stay in x's dtype (bf16 in -> bf16 MXU passes); accumulate in f32.
    acc_ref[...] += jax.lax.dot_general(
        x_ref[...], p_ref[...],
        dimension_numbers=(((1,), (0,)), ((), ())),
        preferred_element_type=jnp.float32,
    )

    @pl.when(k == pl.num_programs(2) - 1)
    def _():
        y_ref[...] = acc_ref[...].astype(y_ref.dtype)


# ----------------------------------------------------------------------------
# Tiling helpers (all static, based on shapes only)
# ----------------------------------------------------------------------------
def _choose_batch_tile(B, block_b):
    tb = min(block_b, B)
    # Ensure at least 2 batch grid steps when B allows (v7x: 2 TCs over 'parallel').
    if B >= 16:
        half = (B // 2) // 8 * 8
        tb = min(tb, max(8, half))
    # Sublane (8) alignment when possible; otherwise tb == B (full dim is legal).
    if B >= 8:
        tb = max(8, (tb // 8) * 8)
    return tb


def _choose_feature_tile(F, itemsize):
    # Single-shot (resident P) if the dense one-hot is comfortably small.
    if F * F * itemsize <= 8 * 1024 * 1024:
        return F
    # Otherwise tile the contraction/output feature axes (multiples of 256/128).
    for t in (512, 256, 128):
        if F % t == 0:
            return t
    return F  # odd F with huge F^2: fall back to full width (rare)


# ----------------------------------------------------------------------------
# Wrapper
# ----------------------------------------------------------------------------
def permutation_forward(x, p_idx, *, block_b=512):
    """Pallas-backed forward of Permutation: returns (x[:, p_idx], 0)."""
    B, F = x.shape
    itemsize = x.dtype.itemsize

    # One-hot permutation matrix, built ONCE in the wrapper, in x's dtype.
    # P[i, j] = 1 iff i == p[j]  =>  (x @ P)[:, j] = x[:, p[j]].
    p_arr = jnp.asarray(p_idx, dtype=jnp.int32).reshape(F)
    p_mat = (jnp.arange(F, dtype=jnp.int32)[:, None] == p_arr[None, :]).astype(x.dtype)

    tb = _choose_batch_tile(B, block_b)
    tf = _choose_feature_tile(F, itemsize)
    tn = tk = tf

    nb = pl.cdiv(B, tb)
    nj = F // tn
    nk = F // tk
    grid = (nb, nj, nk)

    # VMEM budget: P (resident single buffer, or double-buffered tiles),
    # double-buffered x/y tiles, f32 accumulator.
    p_resident = (tk == F and tn == F)
    p_bufs = 1 if p_resident else 2
    need = (p_bufs * tk * tn * itemsize
            + 2 * tb * tk * itemsize
            + 2 * tb * tn * itemsize
            + tb * tn * 4)
    vmem_limit = int(min(64 * 1024 * 1024,
                         max(32 * 1024 * 1024, need + (4 << 20))))

    p_reads = 1 if p_resident else nb  # resident P is DMA'd once
    bytes_accessed = 2 * B * F * itemsize + p_reads * F * F * itemsize

    y = pl.pallas_call(
        _permutation_kernel,
        out_shape=jax.ShapeDtypeStruct((B, F), x.dtype),
        grid_spec=pltpu.PrefetchScalarGridSpec(
            num_scalar_prefetch=0,
            grid=grid,
            in_specs=[
                pl.BlockSpec((tk, tn), lambda i, j, k: (k, j)),  # P tile (constant -> resident when tk=tn=F)
                pl.BlockSpec((tb, tk), lambda i, j, k: (i, k)),  # x batch/feature tile
            ],
            out_specs=pl.BlockSpec((tb, tn), lambda i, j, k: (i, j)),
            scratch_shapes=[pltpu.VMEM((tb, tn), jnp.float32)],
        ),
        compiler_params=pltpu.CompilerParams(
            dimension_semantics=("parallel", "parallel", "arbitrary"),
            vmem_limit_bytes=vmem_limit,
        ),
        cost_estimate=pl.CostEstimate(
            flops=2 * B * F * F,
            transcendentals=0,
            bytes_accessed=bytes_accessed),
        # NOTE: input_output_aliases={1: 0} (alias x -> y) would halve HBM
        # footprint but donates x; left off so callers can keep using x.
    )(p_mat, x)

    # log-det-Jacobian of a permutation is identically 0 (matches torch's `return ..., 0`).
    return y, 0.0


# ----------------------------------------------------------------------------
# Permutation construction mirroring the module __init__ (p=None / 'flip' / list)
# ----------------------------------------------------------------------------
def make_permutation(in_features, p=None, *, key=None):
    if p is None:
        key = jax.random.PRNGKey(0) if key is None else key
        return jax.random.permutation(key, in_features).astype(jnp.int32)
    if isinstance(p, str) and p == 'flip':
        return jnp.arange(in_features - 1, -1, -1, dtype=jnp.int32)
    p = list(p)
    assert sorted(p) == list(range(in_features)), \
        "p must be a permutation of range(in_features)"
    return jnp.asarray(p, dtype=jnp.int32)


if __name__ == "__main__":
    B, F = 32, 128  # F is a lane-width multiple; F < 128 is a degenerate case

    key = jax.random.PRNGKey(0)
    k_p, k_x = jax.random.split(key)

    p_idx = make_permutation(F, None, key=k_p)               # deterministic random permutation
    x = jax.random.normal(k_x, (B, F), dtype=jnp.float32)

    fwd = jax.jit(functools.partial(permutation_forward))
    y, logdet = fwd(x, p_idx)
    jax.block_until_ready(y)

    assert y.shape == (B, F)
    assert float(logdet) == 0.0
    assert jnp.array_equal(y, x[:, p_idx]), "random-permutation mismatch"

    # 'flip' variant (same compiled kernel, different runtime indices -> no recompile)
    p_flip = make_permutation(F, 'flip')
    y2, _ = fwd(x, p_flip)
    jax.block_until_ready(y2)
    assert jnp.array_equal(y2, x[:, ::-1]), "flip-permutation mismatch"

    # bf16 path: operands stay bf16 on the MXU (0/1 weights exact), result bit-exact
    xb = x.astype(jnp.bfloat16)
    y3, _ = jax.jit(permutation_forward)(xb, p_idx)
    jax.block_until_ready(y3)
    assert y3.dtype == jnp.bfloat16
    assert jnp.array_equal(y3, xb[:, p_idx]), "bf16 permutation mismatch"

    print("KERNEL_OK")
</pallas_src>

<mosaic_0001>
module attributes {stable_mosaic.version = 11 : i64} {
  func.func @_permutation_kernel(%arg0: i32, %arg1: i32, %arg2: i32, %arg3: memref<128x128xf32, #tpu.memory_space<vmem>>, %arg4: memref<16x128xf32, #tpu.memory_space<vmem>>, %arg5: memref<16x128xf32, #tpu.memory_space<vmem>>, %arg6: memref<16x128xf32, #tpu.memory_space<vmem>>) attributes {dimension_semantics = [#tpu.dimension_semantics<parallel>, #tpu.dimension_semantics<parallel>, #tpu.dimension_semantics<arbitrary>], iteration_bounds = array<i64: 2, 1, 1>, scalar_prefetch = 0 : i64, scratch_operands = 1 : i64, tpu.core_type = #tpu.core_type<tc>, window_params = [{transform_indices = @transform_0, window_bounds = array<i64: 128, 128>}, {transform_indices = @transform_1, window_bounds = array<i64: 16, 128>}, {transform_indices = @transform_2, window_bounds = array<i64: 16, 128>}]} {
    %c0_i32 = arith.constant 0 : i32
    %0 = arith.cmpi eq, %arg2, %c0_i32 : i32
    %1 = arith.extui %0 : i1 to i32
    %c0_i32_0 = arith.constant 0 : i32
    %2 = arith.cmpi ne, %1, %c0_i32_0 : i32
    scf.if %2 {
      %cst_10 = arith.constant 0.000000e+00 : f32
      %12 = vector.broadcast %cst_10 : f32 to vector<16x128xf32>
      %c0_11 = arith.constant 0 : index
      %c0_12 = arith.constant 0 : index
      %13 = vector.load %arg6[%c0_11, %c0_12] : memref<16x128xf32, #tpu.memory_space<vmem>>, vector<16x128xf32>
      tpu.vector_store %arg6[%c0_11, %c0_12], %12 {strides = array<i32>} : memref<16x128xf32, #tpu.memory_space<vmem>>, vector<16x128xf32>,
    } else {
    }
    %c0 = arith.constant 0 : index
    %c0_1 = arith.constant 0 : index
    %3 = vector.load %arg6[%c0, %c0_1] : memref<16x128xf32, #tpu.memory_space<vmem>>, vector<16x128xf32>
    %c0_2 = arith.constant 0 : index
    %c0_3 = arith.constant 0 : index
    %4 = vector.load %arg4[%c0_2, %c0_3] : memref<16x128xf32, #tpu.memory_space<vmem>>, vector<16x128xf32>
    %c0_4 = arith.constant 0 : index
    %c0_5 = arith.constant 0 : index
    %5 = vector.load %arg3[%c0_4, %c0_5] : memref<128x128xf32, #tpu.memory_space<vmem>>, vector<128x128xf32>
    %cst = arith.constant dense<0.000000e+00> : vector<16x128xf32>
    %6 = tpu.matmul %4, %5, %cst {dimension_numbers = #tpu.dot_dimension_numbers<[1], [0], [0], [1], [0, 0, 1, 1], [], []>} : vector<16x128xf32>, vector<128x128xf32>, vector<16x128xf32> -> vector<16x128xf32>
    %7 = arith.addf %3, %6 : vector<16x128xf32>
    %c0_6 = arith.constant 0 : index
    %c0_7 = arith.constant 0 : index
    %8 = vector.load %arg6[%c0_6, %c0_7] : memref<16x128xf32, #tpu.memory_space<vmem>>, vector<16x128xf32>
    tpu.vector_store %arg6[%c0_6, %c0_7], %7 {strides = array<i32>} : memref<16x128xf32, #tpu.memory_space<vmem>>, vector<16x128xf32>,
    %c0_i32_8 = arith.constant 0 : i32
    %9 = arith.cmpi eq, %arg2, %c0_i32_8 : i32
    %10 = arith.extui %9 : i1 to i32
    %c0_i32_9 = arith.constant 0 : i32
    %11 = arith.cmpi ne, %10, %c0_i32_9 : i32
    scf.if %11 {
      %c0_10 = arith.constant 0 : index
      %c0_11 = arith.constant 0 : index
      %12 = vector.load %arg6[%c0_10, %c0_11] : memref<16x128xf32, #tpu.memory_space<vmem>>, vector<16x128xf32>
      %c0_12 = arith.constant 0 : index
      %c0_13 = arith.constant 0 : index
      %13 = vector.load %arg5[%c0_12, %c0_13] : memref<16x128xf32, #tpu.memory_space<vmem>>, vector<16x128xf32>
      tpu.vector_store %arg5[%c0_12, %c0_13], %12 {strides = array<i32>} : memref<16x128xf32, #tpu.memory_space<vmem>>, vector<16x128xf32>,
    } else {
    }
    return
  }
  func.func @transform_0(%arg0: i32, %arg1: i32, %arg2: i32) -> (i32, i32) {
    %c0_i32 = arith.constant 0 : i32
    return %arg2, %arg1 : i32, i32
  }
  func.func @transform_1(%arg0: i32, %arg1: i32, %arg2: i32) -> (i32, i32) {
    %c0_i32 = arith.constant 0 : i32
    return %arg0, %arg2 : i32, i32
  }
  func.func @transform_2(%arg0: i32, %arg1: i32, %arg2: i32) -> (i32, i32) {
    %c0_i32 = arith.constant 0 : i32
    return %arg0, %arg1 : i32, i32
  }
}

</mosaic_0001>

<bundles_post_ra>
// kernel: permutation_forward.1
= control target key start
LH: loop header
LB: loop body
LE: loop exit
PB: predicated region body
PF: predicated region fallthrough
CT: control target
= control target key end

     0   :  { %7 = vsyncpa [#allocation4], 0  ;;  %s819_s0 = inlined_call_operand.vmem [shape: f32[128,128], index: 0, kind: input, shape index: {}]   ;;  %s820_s1 = inlined_call_operand.vmem [shape: f32[32,128], index: 1, kind: input, shape index: {}]   ;;  %s821_s2 = inlined_call_operand.hbm [shape: f32[32,128], index: 2, kind: output, shape index: {}]  }
   0x1   :  { %9 = vsyncpa [#allocation4 + $0x1], 0  ;;  %s654_s9 = smov 0   ;;  %s656_s10 = smov 0  }
   0x2   :  { %s658_s11 = smov 0   ;;  %s660_s12 = smov 0  }
   0x3   :  { %s662_s13 = smov 0   ;;  %s664_s14 = smov 0  }
   0x4 LB: > { %s433_s15 = sadd.s32 4294967295, %s634_s14   ;;  %s434_s16 = sadd.s32 4294967294, %s634_s14   ;;  %s634_s14 = sphi %s664_s14, %s15_s14   ;;  %s630_s13 = sphi %s662_s13, %s828_s13   ;;  %s626_s12 = sphi %s660_s12, %s827_s12   ;;  %s622_s11 = sphi %s658_s11, %s826_s11   ;;  %s618_s10 = sphi %s656_s10, %s825_s10   ;;  %s614_s9 = sphi %s654_s9, %s824_s9  }
   0x5   : > { %s34_s17 = sadd.s32 1, %s630_s13  ;;  %s99_s18 = sadd.s32 1, %s622_s11 }
   0x6   : > { %p36_p0 = scmp.ge.s32.totalorder %s34_s17, 2  ;;  %p109_p1 = scmp.ne.s32.totalorder %s622_s11, %s618_s10 }
   0x7   : > { %p110_p2 = scmp.eq.s32.totalorder %s433_s15, 1  ;;  %p115_p3 = scmp.ne.s32.totalorder %s618_s10, %s614_s9 }
   0x8   : > { %s830_s17 = smov (%p36_p0, %s34_s17), 0  ;;  %p116_p5 = scmp.eq.s32.totalorder %s434_s16, 1 }
   0x9   : > { %p694_p4 = por %p110_p2, %p109_p1  ;;  %s94_s20 = ssub.s32 %s630_s13, %s830_s17 }
   0xa   : > { %p438_p6 = scmp.ge.s32.totalorder %s634_s14, 1  ;;  %p97_p7 = scmp.eq.s32.totalorder %s94_s20, 0 }
   0xb   : > { %p701_p8 = por %p116_p5, %p115_p3  ;;  %p158_p9 = scmp.lt.s32.totalorder %s634_s14, 3 }
   0xc   : > { %s707_s22 = scalar_select %p97_p7, %s622_s11, %s99_s18  }
   0xd   : > { %p159_p10 = pnand %p438_p6, %p158_p9 }
   0xe   : > { %s440_s27 = sshll.u32 (!%p159_p10), %s626_s12, 1  ;;  %s188_s25 = sand.u32 (!%p159_p10), 1, %s618_s10  }
   0xf   : > { %162 = sbr.rel (%p159_p10) target bundleno = 262 (0x106), region = 28  ;;  %p201_p11 = scmp.lt.s32.totalorder (!%p159_p10), %s440_s27, 3 }
  0x10   : > { %s439_s26 = sshll.u32 (!%p159_p10), %s188_s25, 4  ;;  %s447_s29 = sshll.u32 (!%p159_p10), %s626_s12, 8 }
  0x11   : > { %s636_s12 = smov (!%p159_p10), [#allocation3]  }
  0x12   : > { %s562_s6 = sshll.u32 (!%p159_p10), %s636_s12, 4  ;;  %s563_s6 = int_to_ptr.vmem [resolvable:$false] %s562_s6 }
  0x13   : > { %s564_s7 = scalar_lea.vmem (!%p159_p10), %s563_s6, 512 }
  0x14   : > { %v235_v0 = vld [vmem:[%s819_s0 + $0x78] sm:$0xff]  ;;  %v234_v1 = vld [vmem:[%s819_s0 + $0x70] sm:$0xff]  ;;  %v233_v2 = vld [vmem:[%s819_s0 + $0x68] sm:$0xff]  ;;  %s832_s27 = smov (!%p201_p11, %s440_s27), 3 }
  0x15   : > { %466 = vmatprep.subr.mxu0 %v235_v0  ;;  %v232_v3 = vld [vmem:[%s819_s0 + $0x60] sm:$0xff]  ;;  %s441_s4 = sshll.u32 %s832_s27, 3  ;;  %v231_v4 = vld [vmem:[%s819_s0 + $0x58] sm:$0xff]  ;;  %v230_v6 = vld [vmem:[%s819_s0 + $0x50] sm:$0xff]  ;;  %s190_s27 = scalar_lea.vmem [#allocation3], %s439_s26 }
  0x16   : > { %467 = vmatpush3.msra.mxu0 %v235_v0  ;;  %s728_s15 = scalar_lea.vmem %s820_s1, %s441_s4  ;;  %v229_v7 = vld [vmem:[%s819_s0 + $0x48] sm:$0xff]  ;;  %v228_v8 = vld [vmem:[%s819_s0 + $0x40] sm:$0xff]  ;;  %v227_v9 = vld [vmem:[%s819_s0 + $0x38] sm:$0xff]  ;;  %s337_s28 = sshll.u32 %s190_s27, 4  ;;  %s767_s28 = int_to_ptr.vmem [resolvable:$true] %s337_s28 }
  0x17   : > { %468 = vmatprep.subr.mxu0 %v234_v1  ;;  %v218_v5 = vld [vmem:[%s728_s15] sm:$0xff]  ;;  %v226_v10 = vld [vmem:[%s819_s0 + $0x30] sm:$0xff]  ;;  %v225_v11 = vld [vmem:[%s819_s0 + $0x28] sm:$0xff]  ;;  %s772_s4 = scalar_lea.hbm %s821_s2, %s447_s29  ;;  %s558_s5 = scalar_lea.vmem %s767_s28, 256 }
  0x18   : > { %469 = vmatpush3.msra.mxu0 %v234_v1  ;;  %498 = vmatprep.mubr.f32.mxu0 %v218_v5  ;;  %v224_v12 = vld [vmem:[%s819_s0 + $0x20] sm:$0xff]  ;;  %v223_v13 = vld [vmem:[%s819_s0 + $0x18] sm:$0xff]  ;;  %v222_v14 = vld [vmem:[%s819_s0 + $0x10] sm:$0xff]  ;;  %p559_p12 = scmp.ne.s32.totalorder %s767_s28, %s558_s5  ;;  %p565_p1 = scmp.lt.s32.totalorder %s767_s28, %s563_s6 }
  0x19   : > { %470 = vmatprep.subr.mxu0 %v233_v2  ;;  %v221_v15 = vld [vmem:[%s819_s0 + $0x8] sm:$0xff]  ;;  %v220_v16 = vld [vmem:[%s819_s0] sm:$0xff]  ;;  %p566_p2 = scmp.lt.s32.totalorder %s564_s7, %s558_s5 }
  0x1a   : > { %471 = vmatpush3.msra.mxu0 %v233_v2  ;;  %v219_v17 = vld [vmem:[%s728_s15 + $0x8] sm:$0xff]  ;;  %s774_s15 = scalar_lea.sflag [#allocation4], %s188_s25  ;;  %p560_p13 = pnand %p559_p12, %p694_p4 }
  0x1b   : > { %472 = vmatprep.subr.mxu0 %v232_v3  ;;  %p567_p3 = por %p566_p2, %p565_p1 }
  0x1c   : > { %473 = vmatpush3.msra.mxu0 %v232_v3  ;;  %p561_p0 = pneg %p560_p13 }
  0x1d   : > { %474 = vmatprep.subr.mxu0 %v231_v4 }
  0x1e   : > { %475 = vmatpush3.msra.mxu0 %v231_v4  ;;  %p568_p5 = pnand %p567_p3, %p561_p0 }
  0x1f   : > { %476 = vmatprep.subr.mxu0 %v230_v6 }
  0x20   : > { %477 = vmatpush3.msra.mxu0 %v230_v6 }
  0x21   : > { %478 = vmatprep.subr.mxu0 %v229_v7 }
  0x22   : > { %479 = vmatpush3.msra.mxu0 %v229_v7 }
  0x23   : > { %480 = vmatprep.subr.mxu0 %v228_v8 }
  0x24   : > { %481 = vmatpush3.msra.mxu0 %v228_v8 }
  0x25   : > { %482 = vmatprep.subr.mxu0 %v227_v9 }
  0x26   : > { %483 = vmatpush3.msra.mxu0 %v227_v9 }
  0x27   : > { %484 = vmatprep.subr.mxu0 %v226_v10 }
  0x28   : > { %485 = vmatpush3.msra.mxu0 %v226_v10 }
  0x29   : > { %486 = vmatprep.subr.mxu0 %v225_v11 }
  0x2a   : > { %487 = vmatpush3.msra.mxu0 %v225_v11 }
  0x2b   : > { %488 = vmatprep.subr.mxu0 %v224_v12 }
  0x2c   : > { %489 = vmatpush3.msra.mxu0 %v224_v12 }
  0x2d   : > { %490 = vmatprep.subr.mxu0 %v223_v13 }
  0x2e   : > { %491 = vmatpush3.msra.mxu0 %v223_v13 }
  0x2f   : > { %492 = vmatprep.subr.mxu0 %v222_v14 }
  0x30   : > { %493 = vmatpush3.msra.mxu0 %v222_v14 }
  0x31   : > { %494 = vmatprep.subr.mxu0 %v221_v15 }
  0x32   : > { %495 = vmatpush3.msra.mxu0 %v221_v15 }
  0x33   : > { %496 = vmatprep.subr.mxu0 %v220_v16 }
  0x34   : > { %497 = vmatpush3.msra.mxu0 %v220_v16 }
  0x35   : > { %499 = vmatmul.mubr.f32.vlgmr.msra.gmra.mxu0 %v219_v17 }
  0xf5   : > { %v500_v18 = vpop.f32.mrf.mxu0 }
  0xf6   : > { %321 = vst [vmem:[%s190_s27 + $0x8] sm:$0xff] %v500_v18 }
  0xf7   : > { %v302_v19 = vpop.f32.mrf.mxu0 }
  0xf8   : > { %320 = vst [vmem:[%s190_s27] sm:$0xff] %v302_v19 }
  0xf9   : > { %571 = shalt.err (!%p568_p5)
}
  0xfa   : > { %s572_s8 = scalar_lea.hbm %s772_s4, 256  ;;  %s576_s20 = scalar_lea.hbm %s821_s2, 512 }
  0xfb   : > { %p573_p6 = scmp.ne.s32.totalorder %s772_s4, %s572_s8  ;;  %p577_p10 = scmp.lt.s32.totalorder %s772_s4, %s821_s2 }
  0xfc   : > { %p578_p11 = scmp.lt.s32.totalorder %s576_s20, %s572_s8 }
  0xfd   : > { %p574_p7 = pnand %p573_p6, %p694_p4 }
  0xfe   : > { %p579_p12 = por %p578_p11, %p577_p10 }
  0xff   : > { %p575_p9 = pneg %p574_p7 }
 0x101   : > { %p580_p13 = pnand %p579_p12, %p575_p9 }
 0x103   : > { %583 = shalt.err (!%p580_p13)
}
 0x104   : > { %s637_s25 = smov 128   ;;  %s638_s26 = smov 8  }
 0x105   : > { %501 = dma.vmem_to_hbm [thread:$0]  (%p694_p4), %s767_s28, 256, %s772_s4, %s774_s15, %s637_s25, %s637_s25, %s638_s26  }
 0x106 PF: > { %p507_p0 = scmp.ge.s32.totalorder %s634_s14, 2  ;;  %s352_s27 = sand.u32 1, %s614_s9  }
 0x107   : > { %s353_s29 = scalar_lea.sflag [#allocation4], %s352_s27 }
 0x108   : > { %p504_p1 = pnand %p507_p0, %p701_p8 }
 0x10a   : > { %p505_p2 = pneg %p504_p1 }
 0x10c   : > { %609 = dma.done.wait (%p505_p2), %s353_s29, 256  }
 0x10d   : > { %611 = vsyncadd (%p505_p2), %s353_s29, 4294967040  ;;  %s15_s14 = sadd.s32 1, %s634_s14   ;;  %s824_s9 = smov %s618_s10 }
 0x10e   : > { %p12_p3 = scmp.ge.s32.totalorder %s15_s14, 4   ;;  %s825_s10 = smov %s622_s11 }
 0x10f   : > { %s826_s11 = smov %s707_s22  ;;  %s827_s12 = smov %s630_s13 }
 0x110   : > { %s828_s13 = smov %s830_s17  ;;  %14 = sbr.rel (!%p12_p3) target bundleno = 4 (0x4), region = 74 }
 0x115   :  { %358 = vsyncpa [#allocation4], 1 }
 0x116   :  { %360 = vsyncpa [#allocation4 + $0x1], 1 }

</bundles_post_ra>
